<compile_context>
chip_gen: v6e
topology: v6e:2x2x1
jax: 0.10.0
libtpu: 0.0.40
codegen_flags: <defaults>
</compile_context>

<pallas_src>
import functools

import jax
import jax.numpy as jnp
import numpy as np
from jax.experimental import pallas as pl
from jax.experimental.pallas import tpu as pltpu


def _round_up(x: int, m: int) -> int:
    return (x + m - 1) // m * m


def _tpu_kind() -> str:
    dev = jax.devices()[0]
    return dev.device_kind.lower() if dev.platform == "tpu" else ""


def _is_v7x() -> bool:
    kind = _tpu_kind()
    return any(tag in kind for tag in ("v7", "7x"))


def default_tanh_dtype():
    """bf16 compute only where the EUP/VPU have a bf16 path (v6e / v7x)."""
    kind = _tpu_kind()
    if not kind:
        return jnp.float32
    if any(tag in kind for tag in ("v6", "v7", "7x", "trillium")):
        return jnp.bfloat16
    return jnp.float32


def _vmem_budgets():
    """(vmem_limit_bytes, tile_budget_bytes) — generation aware."""
    if _is_v7x():
        # 64 MiB physical VMEM per TC: keep explicit headroom.
        return 44 * 1024 * 1024, 20 * 1024 * 1024
    # v5e / v6e (and v4/v5p): 128 MiB physical, 32 MiB default scoped — raise it.
    return 64 * 1024 * 1024, 32 * 1024 * 1024


def _auto_t_tile(T, U_pad, H, h_chunk, d_enc, itemsize, tile_budget, min_t_steps):
    """Largest tT (multiple of 8, <= 256) whose working set fits the tile budget."""
    hc = max(1, min(h_chunk, H))
    # Step-invariant bytes: dec_projT block (2x buffered), W_enc (2x), misc slack.
    fixed = (2 * H * U_pad * itemsize          # dec_projT block, double-buffered
             + 2 * d_enc * H * itemsize        # W_enc, double-buffered
             + 256 * 1024)
    # Per-tT-row bytes: chunked combine/weighted (+ f32 partial), f32 score/exp/probs,
    # double-buffered f32 output block, encoder tile, enc_proj.
    per_row = (U_pad * hc * (2 * itemsize + 4)
               + U_pad * 4 * 6
               + 2 * d_enc * itemsize
               + 2 * H * 4)
    avail = max(tile_budget - fixed, per_row * 8)
    tT = 256
    while tT > 8 and tT * per_row > avail:
        tT //= 2
    tT = min(tT, max(8, _round_up(T, 8)))
    # Guarantee >= min_t_steps T tiles (megacore on v7x when B == 1).
    while min_t_steps > 1 and tT > 8 and -(-_round_up(T, 8) // tT) < min_t_steps:
        tT //= 2
    return max(8, (tT // 8) * 8)


def _alignment_kernel(enc_ref, dproj_ref, w_enc_ref, b_enc_ref, w_score_ref,
                      out_ref, *, u_valid, tanh_dtype, h_chunk):
    # enc_ref:    (1, tT, d_enc)  compute dtype — one T tile of one batch element.
    # dproj_ref:  (1, H, U_pad)   compute dtype — decoder projection, U on lanes.
    # w_enc_ref:  (d_enc, H), b_enc_ref: (1, H) f32, w_score_ref: (H, 1).
    tT = enc_ref.shape[1]
    H = w_enc_ref.shape[1]
    U_pad = out_ref.shape[2]

    # Encoder projection on the MXU (bf16-in / f32-acc on v6e/v7x, f32 on v5e).
    enc_proj = jnp.dot(enc_ref[0], w_enc_ref[...],
                       preferred_element_type=jnp.float32) + b_enc_ref[...]   # (tT, H)
    ep = enc_proj.astype(tanh_dtype)                                          # (tT, H)
    dpt = dproj_ref[0]                                                        # (H, U_pad)
    w_s = w_score_ref[...]                                                    # (H, 1)

    # Pairwise combine + tanh with U_pad on lanes, processed in H slabs with a
    # running f32 accumulator: no full-tensor f32 upcast, and the live 3-D
    # intermediate is bounded to (tT, hc, U_pad).
    hc = max(1, min(h_chunk, H))
    score = jnp.zeros((tT, U_pad), jnp.float32)
    for h0 in range(0, H, hc):
        h1 = min(h0 + hc, H)
        comb = jnp.tanh(ep[:, h0:h1, None] + dpt[None, h0:h1, :])       # (tT, h, U_pad)
        weighted = comb * w_s[None, h0:h1, :]                           # compute dtype
        score = score + jnp.sum(weighted.astype(jnp.float32), axis=1)   # f32 accumulate

    # NOTE: linear_score's scalar bias is intentionally omitted — a constant added to
    # every logit is cancelled by the softmax over U (softmax-invariant dead math).

    # Mask padded decoder tokens so the softmax only covers the real U columns.
    if u_valid < U_pad:
        lane = jax.lax.broadcasted_iota(jnp.int32, score.shape, 1)
        score = jnp.where(lane < u_valid, score, jnp.float32(-1e30))

    # Softmax over the decoder-token axis (lanes).  Exact divide on the tiny (tT, 1)
    # denominator so each output row sums to exactly 1.
    m = jnp.max(score, axis=-1, keepdims=True)
    e = jnp.exp(score - m)
    denom = jnp.sum(e, axis=-1, keepdims=True)
    out_ref[0] = (e / denom).astype(out_ref.dtype)


@functools.partial(jax.jit, static_argnames=("t_tile", "tanh_dtype", "h_chunk"))
def alignment_predictor(encoder_out, decoder_out, params, *,
                        t_tile=None, tanh_dtype=jnp.float32, h_chunk=32):
    """encoder_out: [B, T, d_enc], decoder_out: [B, U, d_dec] -> [B, T, U] alignments."""
    B, T, d_enc = encoder_out.shape
    _, U, d_dec = decoder_out.shape
    w_enc, b_enc, w_dec, b_dec, w_score, _b_score = params   # b_score: softmax-invariant
    H = w_enc.shape[1]

    # Lane-dense softmax / output axis: pad U up to a multiple of 128.
    U_pad = max(128, _round_up(U, 128))
    itemsize = jnp.dtype(tanh_dtype).itemsize

    vmem_limit, tile_budget = _vmem_budgets()
    min_t_steps = 2 if (B == 1 and _is_v7x()) else 1
    tT = t_tile if t_tile is not None else _auto_t_tile(
        T, U_pad, H, h_chunk, d_enc, itemsize, tile_budget, min_t_steps)
    tT = max(8, (int(tT) // 8) * 8)            # keep tT a multiple of 8 (sublanes)
    T_pad = _round_up(T, tT)

    # Encoder path: cast to the compute dtype in the wrapper (halves HBM->VMEM DMA
    # on the bf16 path), pad T to a whole number of tiles.
    enc_p = encoder_out.astype(tanh_dtype)
    if T_pad != T:
        enc_p = jnp.pad(enc_p, ((0, 0), (0, T_pad - T), (0, 0)))
    w_enc_c = w_enc.astype(tanh_dtype)

    # Decoder projection hoisted out of the kernel (O(B*U*H) — negligible vs the
    # O(B*T*U*H) combine) and produced already transposed to (B, H, U_pad) so the
    # decoder-token axis sits on lanes inside the kernel.  This also removes the
    # decoder block and W_dec/b_dec from the kernel's double-buffered VMEM footprint.
    dec_pad = decoder_out if U_pad == U else jnp.pad(
        decoder_out, ((0, 0), (0, U_pad - U), (0, 0)))
    dec_proj_t = (jnp.einsum("bud,dh->bhu", dec_pad, w_dec)
                  + b_dec[0][None, :, None]).astype(tanh_dtype)          # (B, H, U_pad)

    w_score_col = w_score.T.astype(tanh_dtype)                           # (H, 1)

    kernel = functools.partial(_alignment_kernel, u_valid=U,
                               tanh_dtype=tanh_dtype, h_chunk=h_chunk)

    grid_spec = pltpu.PrefetchScalarGridSpec(
        num_scalar_prefetch=0,
        grid=(B, T_pad // tT),
        in_specs=[
            pl.BlockSpec((1, tT, d_enc), lambda b, t: (b, t, 0)),        # encoder tile
            pl.BlockSpec((1, H, U_pad), lambda b, t: (b, 0, 0)),         # dec_projT
            pl.BlockSpec((d_enc, H), lambda b, t: (0, 0)),               # W_enc
            pl.BlockSpec((1, H), lambda b, t: (0, 0)),                   # b_enc
            pl.BlockSpec((H, 1), lambda b, t: (0, 0)),                   # w_score (col)
        ],
        out_specs=pl.BlockSpec((1, tT, U_pad), lambda b, t: (b, t, 0)),
    )

    out = pl.pallas_call(
        kernel,
        out_shape=jax.ShapeDtypeStruct((B, T_pad, U_pad), jnp.float32),
        grid_spec=grid_spec,
        compiler_params=pltpu.CompilerParams(
            dimension_semantics=("parallel", "parallel"),   # batch x T-tiles
            vmem_limit_bytes=vmem_limit,                    # generation-aware
        ),
    )(enc_p, dec_proj_t, w_enc_c, b_enc, w_score_col)

    return out[:, :T, :U]


def init_params(key, d_enc, d_dec, hidden_dim):
    """Deterministic synthetic weights (PyTorch-Linear shapes, stored transposed)."""
    k1, k2, k3, k4, k5, k6 = jax.random.split(key, 6)
    # nn.Linear(d, H): weight (H, d), bias (H). We store W^T as (d, H) for x @ W^T.
    w_enc = jax.random.normal(k1, (d_enc, hidden_dim), jnp.float32) * (1.0 / np.sqrt(d_enc))
    b_enc = jax.random.normal(k2, (1, hidden_dim), jnp.float32) * 0.02
    w_dec = jax.random.normal(k3, (d_dec, hidden_dim), jnp.float32) * (1.0 / np.sqrt(d_dec))
    b_dec = jax.random.normal(k4, (1, hidden_dim), jnp.float32) * 0.02
    # nn.Linear(H, 1): weight (1, H), bias (1,). Stored as (1, H) row + (1, 1) scalar.
    w_score = jax.random.normal(k5, (1, hidden_dim), jnp.float32) * (1.0 / np.sqrt(hidden_dim))
    b_score = jax.random.normal(k6, (1, 1), jnp.float32) * 0.02
    return (w_enc, b_enc, w_dec, b_dec, w_score, b_score)


def reference(encoder_out, decoder_out, params):
    """Pure-JAX reference mirroring the PyTorch forward (all f32, includes b_score)."""
    w_enc, b_enc, w_dec, b_dec, w_score, b_score = params
    enc_proj = encoder_out @ w_enc + b_enc[0]                                   # (B, T, H)
    dec_proj = decoder_out @ w_dec + b_dec[0]                                   # (B, U, H)
    combined = jnp.tanh(enc_proj[:, :, None, :] + dec_proj[:, None, :, :])      # (B, T, U, H)
    score = jnp.einsum("btuh,h->btu", combined, w_score[0]) + b_score[0, 0]     # (B, T, U)
    return jax.nn.softmax(score, axis=-1)


if __name__ == "__main__":
    B, T, U = 2, 16, 8
    d_enc, d_dec, hidden_dim = 16, 12, 32

    key = jax.random.PRNGKey(0)
    k_enc, k_dec, k_par = jax.random.split(key, 3)
    encoder_out = jax.random.normal(k_enc, (B, T, d_enc), jnp.float32)
    decoder_out = jax.random.normal(k_dec, (B, U, d_dec), jnp.float32)
    params = init_params(k_par, d_enc, d_dec, hidden_dim)

    tanh_dtype = default_tanh_dtype()
    # t_tile=8 exercises the (batch, T-tile) grid; h_chunk=16 exercises the chunked
    # H reduction (two slabs at hidden_dim=32) even at the toy sizes.
    out = alignment_predictor(encoder_out, decoder_out, params,
                              t_tile=8, tanh_dtype=tanh_dtype, h_chunk=16)
    out = jax.block_until_ready(out)

    ref = reference(encoder_out, decoder_out, params)
    # bf16 combine on v6e/v7x trades a little accuracy for ~2x on the dominant stage.
    tol = 5e-2 if tanh_dtype == jnp.bfloat16 else 5e-3
    np.testing.assert_allclose(np.asarray(out), np.asarray(ref), rtol=tol, atol=tol)
    # Rows are exact softmax rows (exact divide on the denominator).
    np.testing.assert_allclose(np.asarray(out).sum(-1), 1.0, rtol=1e-3, atol=1e-3)

    print("KERNEL_OK")
</pallas_src>

<mosaic_0001>
module attributes {stable_mosaic.version = 11 : i64} {
  func.func @_alignment_kernel(%arg0: i32, %arg1: i32, %arg2: memref<1x8x16xf32, #tpu.memory_space<vmem>>, %arg3: memref<1x32x128xf32, #tpu.memory_space<vmem>>, %arg4: memref<16x32xf32, #tpu.memory_space<vmem>>, %arg5: memref<1x32xf32, #tpu.memory_space<vmem>>, %arg6: memref<32x1xf32, #tpu.memory_space<vmem>>, %arg7: memref<1x8x128xf32, #tpu.memory_space<vmem>>) attributes {dimension_semantics = [#tpu.dimension_semantics<parallel>, #tpu.dimension_semantics<parallel>], iteration_bounds = array<i64: 2, 2>, scalar_prefetch = 0 : i64, scratch_operands = 0 : i64, tpu.core_type = #tpu.core_type<tc>, window_params = [{transform_indices = @transform_0, window_bounds = array<i64: 1, 8, 16>}, {transform_indices = @transform_1, window_bounds = array<i64: 1, 32, 128>}, {pipeline_mode = #tpu.pipeline_mode<synchronous>, transform_indices = @transform_2, window_bounds = array<i64: 16, 32>}, {pipeline_mode = #tpu.pipeline_mode<synchronous>, transform_indices = @transform_3, window_bounds = array<i64: 1, 32>}, {pipeline_mode = #tpu.pipeline_mode<synchronous>, transform_indices = @transform_4, window_bounds = array<i64: 32, 1>}, {transform_indices = @transform_5, window_bounds = array<i64: 1, 8, 128>}]} {
    %c0 = arith.constant 0 : index
    %c0_0 = arith.constant 0 : index
    %c0_1 = arith.constant 0 : index
    %0 = vector.load %arg2[%c0, %c0_0, %c0_1] : memref<1x8x16xf32, #tpu.memory_space<vmem>>, vector<1x8x16xf32>
    %1 = vector.shape_cast %0 : vector<1x8x16xf32> to vector<8x16xf32>
    %c0_2 = arith.constant 0 : index
    %c0_3 = arith.constant 0 : index
    %2 = vector.load %arg4[%c0_2, %c0_3] : memref<16x32xf32, #tpu.memory_space<vmem>>, vector<16x32xf32>
    %cst = arith.constant dense<0.000000e+00> : vector<8x32xf32>
    %3 = tpu.matmul %1, %2, %cst {dimension_numbers = #tpu.dot_dimension_numbers<[1], [0], [0], [1], [0, 0, 1, 1], [], []>} : vector<8x16xf32>, vector<16x32xf32>, vector<8x32xf32> -> vector<8x32xf32>
    %c0_4 = arith.constant 0 : index
    %c0_5 = arith.constant 0 : index
    %4 = vector.load %arg5[%c0_4, %c0_5] : memref<1x32xf32, #tpu.memory_space<vmem>>, vector<1x32xf32>
    %5 = vector.broadcast %4 : vector<1x32xf32> to vector<8x32xf32>
    %6 = arith.addf %3, %5 : vector<8x32xf32>
    %c0_6 = arith.constant 0 : index
    %c0_7 = arith.constant 0 : index
    %c0_8 = arith.constant 0 : index
    %7 = vector.load %arg3[%c0_6, %c0_7, %c0_8] : memref<1x32x128xf32, #tpu.memory_space<vmem>>, vector<1x32x128xf32>
    %8 = vector.shape_cast %7 : vector<1x32x128xf32> to vector<32x128xf32>
    %c0_9 = arith.constant 0 : index
    %c0_10 = arith.constant 0 : index
    %9 = vector.load %arg6[%c0_9, %c0_10] : memref<32x1xf32, #tpu.memory_space<vmem>>, vector<32x1xf32>
    %cst_11 = arith.constant 0.000000e+00 : f32
    %10 = vector.broadcast %cst_11 : f32 to vector<8x128xf32>
    %11 = vector.extract_strided_slice %6 {offsets = [0, 0], sizes = [8, 16], strides = [1, 1]} : vector<8x32xf32> to vector<8x16xf32>
    %12 = vector.shape_cast %11 : vector<8x16xf32> to vector<8x16x1xf32>
    %13 = vector.extract_strided_slice %8 {offsets = [0, 0], sizes = [16, 128], strides = [1, 1]} : vector<32x128xf32> to vector<16x128xf32>
    %14 = vector.shape_cast %13 : vector<16x128xf32> to vector<1x16x128xf32>
    %15 = vector.broadcast %12 : vector<8x16x1xf32> to vector<8x16x128xf32>
    %16 = vector.broadcast %14 : vector<1x16x128xf32> to vector<8x16x128xf32>
    %17 = arith.addf %15, %16 : vector<8x16x128xf32>
    %18 = math.tanh %17 : vector<8x16x128xf32>
    %19 = vector.extract_strided_slice %9 {offsets = [0, 0], sizes = [16, 1], strides = [1, 1]} : vector<32x1xf32> to vector<16x1xf32>
    %20 = vector.shape_cast %19 : vector<16x1xf32> to vector<1x16x1xf32>
    %21 = vector.broadcast %20 : vector<1x16x1xf32> to vector<8x16x128xf32>
    %22 = arith.mulf %18, %21 : vector<8x16x128xf32>
    %cst_12 = arith.constant dense<0.000000e+00> : vector<8x128xf32>
    %23 = vector.multi_reduction <add>, %22, %cst_12 [1] : vector<8x16x128xf32> to vector<8x128xf32>
    %24 = arith.addf %10, %23 : vector<8x128xf32>
    %25 = vector.extract_strided_slice %6 {offsets = [0, 16], sizes = [8, 16], strides = [1, 1]} : vector<8x32xf32> to vector<8x16xf32>
    %26 = vector.shape_cast %25 : vector<8x16xf32> to vector<8x16x1xf32>
    %27 = vector.extract_strided_slice %8 {offsets = [16, 0], sizes = [16, 128], strides = [1, 1]} : vector<32x128xf32> to vector<16x128xf32>
    %28 = vector.shape_cast %27 : vector<16x128xf32> to vector<1x16x128xf32>
    %29 = vector.broadcast %26 : vector<8x16x1xf32> to vector<8x16x128xf32>
    %30 = vector.broadcast %28 : vector<1x16x128xf32> to vector<8x16x128xf32>
    %31 = arith.addf %29, %30 : vector<8x16x128xf32>
    %32 = math.tanh %31 : vector<8x16x128xf32>
    %33 = vector.extract_strided_slice %9 {offsets = [16, 0], sizes = [16, 1], strides = [1, 1]} : vector<32x1xf32> to vector<16x1xf32>
    %34 = vector.shape_cast %33 : vector<16x1xf32> to vector<1x16x1xf32>
    %35 = vector.broadcast %34 : vector<1x16x1xf32> to vector<8x16x128xf32>
    %36 = arith.mulf %32, %35 : vector<8x16x128xf32>
    %cst_13 = arith.constant dense<0.000000e+00> : vector<8x128xf32>
    %37 = vector.multi_reduction <add>, %36, %cst_13 [1] : vector<8x16x128xf32> to vector<8x128xf32>
    %38 = arith.addf %24, %37 : vector<8x128xf32>
    %39 = tpu.iota {dimensions = array<i32: 1>} : vector<8x128xi32>
    %c8_i32 = arith.constant 8 : i32
    %40 = vector.broadcast %c8_i32 : i32 to vector<8x128xi32>
    %41 = arith.cmpi slt, %39, %40 : vector<8x128xi32>
    %cst_14 = arith.constant -1.000000e+30 : f32
    %42 = vector.broadcast %cst_14 : f32 to vector<8x128xf32>
    %43 = arith.select %41, %38, %42 : vector<8x128xi1>, vector<8x128xf32>
    %cst_15 = arith.constant dense<0xFF800000> : vector<8xf32>
    %44 = vector.multi_reduction <maximumf>, %43, %cst_15 [1] : vector<8x128xf32> to vector<8xf32>
    %45 = vector.shape_cast %44 : vector<8xf32> to vector<8x1xf32>
    %46 = vector.broadcast %45 : vector<8x1xf32> to vector<8x128xf32>
    %47 = arith.subf %43, %46 : vector<8x128xf32>
    %48 = math.exp %47 : vector<8x128xf32>
    %cst_16 = arith.constant dense<0.000000e+00> : vector<8xf32>
    %49 = vector.multi_reduction <add>, %48, %cst_16 [1] : vector<8x128xf32> to vector<8xf32>
    %50 = vector.shape_cast %49 : vector<8xf32> to vector<8x1xf32>
    %51 = vector.broadcast %50 : vector<8x1xf32> to vector<8x128xf32>
    %52 = arith.divf %48, %51 : vector<8x128xf32>
    %c0_17 = arith.constant 0 : index
    %c0_18 = arith.constant 0 : index
    %c0_19 = arith.constant 0 : index
    %53 = vector.load %arg7[%c0_17, %c0_18, %c0_19] : memref<1x8x128xf32, #tpu.memory_space<vmem>>, vector<1x8x128xf32>
    %54 = vector.shape_cast %53 : vector<1x8x128xf32> to vector<8x128xf32>
    %55 = vector.shape_cast %52 : vector<8x128xf32> to vector<1x8x128xf32>
    tpu.vector_store %arg7[%c0_17, %c0_18, %c0_19], %55 {strides = array<i32>} : memref<1x8x128xf32, #tpu.memory_space<vmem>>, vector<1x8x128xf32>,
    return
  }
  func.func @transform_0(%arg0: i32, %arg1: i32) -> (i32, i32, i32) {
    %c0_i32 = arith.constant 0 : i32
    %c0_i32_0 = arith.constant 0 : i32
    return %arg0, %arg1, %c0_i32 : i32, i32, i32
  }
  func.func @transform_1(%arg0: i32, %arg1: i32) -> (i32, i32, i32) {
    %c0_i32 = arith.constant 0 : i32
    %c0_i32_0 = arith.constant 0 : i32
    %c0_i32_1 = arith.constant 0 : i32
    return %arg0, %c0_i32, %c0_i32_0 : i32, i32, i32
  }
  func.func @transform_2(%arg0: i32, %arg1: i32) -> (i32, i32) {
    %c0_i32 = arith.constant 0 : i32
    %c0_i32_0 = arith.constant 0 : i32
    %c0_i32_1 = arith.constant 0 : i32
    return %c0_i32, %c0_i32_0 : i32, i32
  }
  func.func @transform_3(%arg0: i32, %arg1: i32) -> (i32, i32) {
    %c0_i32 = arith.constant 0 : i32
    %c0_i32_0 = arith.constant 0 : i32
    %c0_i32_1 = arith.constant 0 : i32
    return %c0_i32, %c0_i32_0 : i32, i32
  }
  func.func @transform_4(%arg0: i32, %arg1: i32) -> (i32, i32) {
    %c0_i32 = arith.constant 0 : i32
    %c0_i32_0 = arith.constant 0 : i32
    %c0_i32_1 = arith.constant 0 : i32
    return %c0_i32, %c0_i32_0 : i32, i32
  }
  func.func @transform_5(%arg0: i32, %arg1: i32) -> (i32, i32, i32) {
    %c0_i32 = arith.constant 0 : i32
    %c0_i32_0 = arith.constant 0 : i32
    return %arg0, %arg1, %c0_i32 : i32, i32, i32
  }
}

</mosaic_0001>

<bundles_post_ra>
// kernel: alignment_predictor.1
= control target key start
LH: loop header
LB: loop body
LE: loop exit
PB: predicated region body
PF: predicated region fallthrough
CT: control target
= control target key end

     0   :  { %s1111_s18 = smov 0   ;;  %s1113_s19 = smov 0   ;;  %s1273_s0 = inlined_call_operand.vmem [shape: f32[2,16,16], index: 0, kind: input, shape index: {}]   ;;  %s1274_s1 = inlined_call_operand.vmem [shape: f32[2,32,128], index: 1, kind: input, shape index: {}]   ;;  %s1275_s2 = inlined_call_operand.vmem [shape: f32[16,32], index: 2, kind: input, shape index: {}]   ;;  %s1276_s3 = inlined_call_operand.vmem [shape: f32[1,32], index: 3, kind: input, shape index: {}]   ;;  %s1277_s4 = inlined_call_operand.vmem [shape: f32[32,1], index: 4, kind: input, shape index: {}]   ;;  %s1278_s5 = inlined_call_operand.vmem [shape: f32[2,16,128], index: 5, kind: output, shape index: {}]  }
   0x1   :  { %s1115_s20 = smov 0   ;;  %s1117_s21 = smov 0  }
   0x2   :  { %s1119_s22 = smov 0  }
   0x3 LB: > { %s24_s23 = sadd.s32 1, %s1068_s20  ;;  %s27_s24 = sadd.s32 1, %s1072_s21  ;;  %s1076_s22 = sphi %s1119_s22, %s15_s22   ;;  %s1072_s21 = sphi %s1117_s21, %s1282_s21   ;;  %s1068_s20 = sphi %s1115_s20, %s1281_s20   ;;  %s1064_s19 = sphi %s1113_s19, %s1280_s19   ;;  %s1060_s18 = sphi %s1111_s18, %s1279_s18  }
   0x4   : > { %p25_p0 = scmp.ge.s32.totalorder %s24_s23, 2  ;;  %p903_p1 = scmp.ge.s32.totalorder %s1076_s22, 1 }
   0x5   : > { %p216_p2 = scmp.lt.s32.totalorder %s1076_s22, 5 }
   0x6   : > { %s1284_s23 = smov (%p25_p0, %s24_s23), 0  ;;  %s1286_s24 = smov (!%p25_p0, %s27_s24), %s1072_s21 }
   0x7   : > { %p217_p3 = pnand %p903_p1, %p216_p2  ;;  %p29_p4 = scmp.ge.s32.totalorder %s1286_s24, 2 }
   0x8   : > { %p255_p5 = scmp.lt.s32.totalorder (!%p217_p3), %s1064_s19, 1  ;;  %p257_p6 = scmp.lt.s32.totalorder (!%p217_p3), %s1060_s18, 1 }
   0x9   : > { %s1288_s24 = smov (%p29_p4, %s1286_s24), 0  ;;  %220 = sbr.rel (%p217_p3) target bundleno = 761 (0x2f9), region = 40 }
   0xe   : > { %v278_v0 = vld [vmem:[%s1275_s2 + $0x8] sm:$0xff]  ;;  %v1078_v1 = vmov 0.0   ;;  %v277_v2 = vld [vmem:[%s1275_s2] sm:$0xff]  ;;  %vm1079_vm0 = vmmov 0   ;;  %s1290_s19 = smov (!%p255_p5, %s1064_s19), 1  ;;  %s1292_s18 = smov (!%p257_p6, %s1060_s18), 1  ;;  %v368_v5 = vlaneseq }
   0xf   : > { %918 = vmatprep.subr.mxu0 %v1078_v1  ;;  %922 = vmatprep.mubr.msk.f32.mxu0 %vm1079_vm0, %v1078_v1  ;;  %s904_s29 = sshll.u32 %s1290_s19, 1  ;;  %vm286_vm1 = vcmask 130048   ;;  %v1080_v4 = vmov 0   ;;  %v910_v7 = vld [vmem:[%s1276_s3] ss:$0 sm:$0xff]  ;;  %v365_v27 = vld [vmem:[%s1277_s4 + $0x8] sm:$0xff] }
  0x10   : > { %919 = vmatpush3.msra.mxu0 %v278_v0  ;;  %s1150_s30 = sadd.s32 %s904_s29, %s1292_s18  ;;  %969 = vset.pattern.permute.xlu1 %v1080_v4  ;;  %v369_v6 = vshrl.u32 %v368_v5, 7  ;;  %v364_v28 = vld [vmem:[%s1277_s4] sm:$0xff]  ;;  %v366_v29 = vld [vmem:[%s1277_s4 + $0x10] sm:$0xff]  ;;  %v367_v30 = vld [vmem:[%s1277_s4 + $0x18] sm:$0xff]  ;;  %s914_s26 = sshll.u32 %s1290_s19, 5  ;;  %vm775_vm2 = vcmask 1041409  }
  0x11   : > { %920 = vmatprep.subr.mxu0 %v1078_v1  ;;  %s905_s6 = sshll.u32 %s1150_s30, 3  ;;  %968 = vset.pattern.permute.xlu0 %v1080_v4  ;;  %s267_s29 = scalar_lea.vmem %s1274_s1, %s914_s26  ;;  %vm777_vm3 = vcmask 1042434   ;;  %vm779_vm4 = vcmask 1043459   ;;  %vm781_vm5 = vcmask 1044484   ;;  %vm783_vm6 = vcmask 1045509  }
  0x12   : > { %921 = vmatpush3.msra.mxu0 %v277_v2  ;;  %s262_s9 = scalar_lea.vmem %s1273_s0, %s905_s6  ;;  %v381_v8 = vsub.s32 1, %v369_v6  ;;  %v370_v9 = vsub.s32 0, %v369_v6  ;;  %v392_v15 = vsub.s32 2, %v369_v6  ;;  %v403_v17 = vsub.s32 3, %v369_v6  ;;  %v360_v51 = vld [vmem:[%s267_s29] sm:$0xff]  ;;  %v361_v54 = vld [vmem:[%s267_s29 + $0x8] sm:$0xff]  ;;  %s275_s8 = scalar_lea.vmem %s1278_s5, %s905_s6 }
  0x13   : > { %v276_v3 = vld [vmem:[%s262_s9] sm:$0xff]  ;;  %v414_v19 = vsub.s32 4, %v369_v6  ;;  %v425_v21 = vsub.s32 5, %v369_v6  ;;  %v436_v23 = vsub.s32 6, %v369_v6  ;;  %v447_v25 = vsub.s32 7, %v369_v6  ;;  %v1184_v57 = vld [vmem:[%s267_s29 + $0x18] sm:$0xff] }
  0x14   : > { %923 = vmatmul.mubr.msk.f32.vlgmr.msra.gmra.mxu0 %vm286_vm1, %v276_v3  ;;  %v1190_v61 = vld [vmem:[%s267_s29 + $0x10] sm:$0xff]  ;;  %vm785_vm7 = vcmask 1046534   ;;  %vm787_vm8 = vcmask 1047559  }
  0xd4   : > { %v356_v10 = vpop.f32.mrf.mxu0 }
  0xd5   : > { %v357_v11 = vadd.f32 %v910_v7, %v356_v10 }
  0xd6   : > { %v924_v12 = vpop.f32.mrf.mxu0 }
  0xd7   : > { %v382_v13 = vrot.slane %v357_v11, %v381_v8  ;;  %v371_v14 = vrot.slane %v357_v11, %v370_v9  ;;  %v393_v16 = vrot.slane %v357_v11, %v392_v15  ;;  %v404_v18 = vrot.slane %v357_v11, %v403_v17 }
  0xd8   : > { %v415_v20 = vrot.slane %v357_v11, %v414_v19  ;;  %v426_v22 = vrot.slane %v357_v11, %v425_v21  ;;  %v437_v24 = vrot.slane %v357_v11, %v436_v23  ;;  %v448_v26 = vrot.slane %v357_v11, %v447_v25 }
  0xd9   : > { %384 = vbcast.lane.b32.xlu1 %v382_v13, 256  ;;  %373 = vbcast.lane.b32.xlu0 %v371_v14, 256 }
  0xdd   : > { %388 = vbcast.lane.b32.xlu1 %v382_v13, 264  ;;  %377 = vbcast.lane.b32.xlu0 %v371_v14, 264 }
  0xe1   : > { %584 = vbcast.lane.b32.xlu1 %v371_v14, 280  ;;  %580 = vbcast.lane.b32.xlu0 %v371_v14, 272 }
  0xe5   : > { %592 = vbcast.lane.b32.xlu1 %v382_v13, 280  ;;  %588 = vbcast.lane.b32.xlu0 %v382_v13, 272 }
  0xe9   : > { %399 = vbcast.lane.b32.xlu1 %v393_v16, 264  ;;  %395 = vbcast.lane.b32.xlu0 %v393_v16, 256 }
  0xed   : > { %600 = vbcast.lane.b32.xlu1 %v393_v16, 280  ;;  %596 = vbcast.lane.b32.xlu0 %v393_v16, 272 }
  0xf1   : > { %410 = vbcast.lane.b32.xlu1 %v404_v18, 264  ;;  %406 = vbcast.lane.b32.xlu0 %v404_v18, 256 }
  0xf5   : > { %608 = vbcast.lane.b32.xlu1 %v404_v18, 280  ;;  %604 = vbcast.lane.b32.xlu0 %v404_v18, 272 }
  0xf9   : > { %421 = vbcast.lane.b32.xlu1 %v415_v20, 264  ;;  %417 = vbcast.lane.b32.xlu0 %v415_v20, 256 }
  0xfd   : > { %616 = vbcast.lane.b32.xlu1 %v415_v20, 280  ;;  %612 = vbcast.lane.b32.xlu0 %v415_v20, 272 }
 0x101   : > { %432 = vbcast.lane.b32.xlu1 %v426_v22, 264  ;;  %428 = vbcast.lane.b32.xlu0 %v426_v22, 256 }
 0x105   : > { %624 = vbcast.lane.b32.xlu1 %v426_v22, 280  ;;  %620 = vbcast.lane.b32.xlu0 %v426_v22, 272 }
 0x109   : > { %443 = vbcast.lane.b32.xlu1 %v437_v24, 264  ;;  %439 = vbcast.lane.b32.xlu0 %v437_v24, 256 }
 0x10d   : > { %632 = vbcast.lane.b32.xlu1 %v437_v24, 280  ;;  %628 = vbcast.lane.b32.xlu0 %v437_v24, 272 }
 0x111   : > { %454 = vbcast.lane.b32.xlu1 %v448_v26, 264  ;;  %450 = vbcast.lane.b32.xlu0 %v448_v26, 256 }
 0x115   : > { %640 = vbcast.lane.b32.xlu1 %v448_v26, 280  ;;  %636 = vbcast.lane.b32.xlu0 %v448_v26, 272 }
 0x119   : > { %495 = vperm.xlu1 %969, %v365_v27   ;;  %490 = vperm.xlu0 %968, %v364_v28  }
 0x11d   : > { %676 = vperm.xlu1 %969, %v366_v29   ;;  %681 = vperm.xlu0 %968, %v367_v30  }
 0x14b   : > { %v385_v31 = vpop.permute.xlu1 %384  ;;  %v374_v32 = vpop.permute.xlu0 %373 }
 0x14c   : > { %v458_v55 = vadd.f32 %v385_v31, %v360_v51  ;;  %v456_v56 = vadd.f32 %v374_v32, %v360_v51 }
 0x14e   : > { %970 = vtanh.f32 %v458_v55 }
 0x14f   : > { %v389_v33 = vpop.permute.xlu1 %388  ;;  %v378_v34 = vpop.permute.xlu0 %377  ;;  %972 = vtanh.f32 %v456_v56 }
 0x150   : > { %v459_v60 = vadd.f32 %v389_v33, %v361_v54  ;;  %v457_v62 = vadd.f32 %v378_v34, %v361_v54 }
 0x152   : > { %974 = vtanh.f32 %v459_v60 }
 0x153   : > { %v585_v35 = vpop.permute.xlu1 %584  ;;  %v581_v36 = vpop.permute.xlu0 %580  ;;  %976 = vtanh.f32 %v457_v62 }
 0x154   : > { %v643_v63 = vadd.f32 %v585_v35, %v1184_v57  ;;  %v642_v0 = vadd.f32 %v581_v36, %v1190_v61 }
 0x156   : > { %978 = vtanh.f32 %v643_v63 }
 0x157   : > { %v593_v37 = vpop.permute.xlu1 %592  ;;  %v589_v38 = vpop.permute.xlu0 %588  ;;  %980 = vtanh.f32 %v642_v0 }
 0x158   : > { %v645_v1 = vadd.f32 %v593_v37, %v1184_v57  ;;  %v644_v3 = vadd.f32 %v589_v38, %v1190_v61 }
 0x15a   : > { %982 = vtanh.f32 %v645_v1 }
 0x15b   : > { %v400_v39 = vpop.permute.xlu1 %399  ;;  %v396_v40 = vpop.permute.xlu0 %395  ;;  %984 = vtanh.f32 %v644_v3 }
 0x15c   : > { %v461_v6 = vadd.f32 %v400_v39, %v361_v54  ;;  %v460_v7 = vadd.f32 %v396_v40, %v360_v51  ;;  %v971_v17 = vpop.eup %970 }
 0x15d   : > { %v973_v19 = vpop.eup %972 }
 0x15e   : > { %986 = vtanh.f32 %v461_v6 }
 0x15f   : > { %v601_v41 = vpop.permute.xlu1 %600  ;;  %v597_v42 = vpop.permute.xlu0 %596  ;;  %988 = vtanh.f32 %v460_v7 }
 0x160   : > { %v647_v8 = vadd.f32 %v601_v41, %v1184_v57  ;;  %v646_v9 = vadd.f32 %v597_v42, %v1190_v61  ;;  %v975_v22 = vpop.eup %974 }
 0x161   : > { %v977_v25 = vpop.eup %976 }
 0x162   : > { %990 = vtanh.f32 %v647_v8 }
 0x163   : > { %v411_v43 = vpop.permute.xlu1 %410  ;;  %v407_v44 = vpop.permute.xlu0 %406  ;;  %992 = vtanh.f32 %v646_v9 }
 0x164   : > { %v463_v10 = vadd.f32 %v411_v43, %v361_v54  ;;  %v462_v12 = vadd.f32 %v407_v44, %v360_v51  ;;  %v1199_v27 = vpop.eup %978 }
 0x165   : > { %v981_v29 = vpop.eup %980 }
 0x166   : > { %994 = vtanh.f32 %v463_v10 }
 0x167   : > { %v1174_v45 = vpop.permute.xlu1 %608  ;;  %v605_v46 = vpop.permute.xlu0 %604  ;;  %996 = vtanh.f32 %v462_v12 }
 0x168   : > { %v648_v14 = vadd.f32 %v605_v46, %v1190_v61  ;;  %v1201_v31 = vpop.eup %982  ;;  %v649_v32 = vadd.f32 %v1174_v45, %v1184_v57 }
 0x169   : > { %v985_v33 = vpop.eup %984 }
 0x16a   : > { %998 = vtanh.f32 %v648_v14 }
 0x16b   : > { %v422_v47 = vpop.permute.xlu1 %421  ;;  %v418_v48 = vpop.permute.xlu0 %417 }
 0x16c   : > { %v465_v15 = vadd.f32 %v422_v47, %v361_v54  ;;  %v464_v16 = vadd.f32 %v418_v48, %v360_v51  ;;  %v987_v35 = vpop.eup %986 }
 0x16d   : > { %v989_v37 = vpop.eup %988 }
 0x16e   : > { %1000 = vtanh.f32 %v465_v15 }
 0x16f   : > { %v1177_v49 = vpop.permute.xlu1 %616  ;;  %v1179_v50 = vpop.permute.xlu0 %612  ;;  %1002 = vtanh.f32 %v464_v16 }
 0x170   : > { %v651_v34 = vadd.f32 %v1177_v49, %v1184_v57  ;;  %v650_v36 = vadd.f32 %v1179_v50, %v1190_v61  ;;  %v1211_v41 = vpop.eup %990 }
 0x171   : > { %v993_v42 = vpop.eup %992 }
 0x173   : > { %v433_v52 = vpop.permute.xlu1 %432  ;;  %v429_v53 = vpop.permute.xlu0 %428 }
 0x174   : > { %v467_v18 = vadd.f32 %v433_v52, %v361_v54  ;;  %v466_v20 = vadd.f32 %v429_v53, %v360_v51  ;;  %v995_v44 = vpop.eup %994 }
 0x175   : > { %v997_v46 = vpop.eup %996 }
 0x176   : > { %1004 = vtanh.f32 %v467_v18 }
 0x177   : > { %v1186_v58 = vpop.permute.xlu1 %624  ;;  %v1188_v59 = vpop.permute.xlu0 %620  ;;  %1006 = vtanh.f32 %v466_v20 }
 0x178   : > { %v653_v38 = vadd.f32 %v1186_v58, %v1184_v57  ;;  %v652_v43 = vadd.f32 %v1188_v59, %v1190_v61  ;;  %v999_v50 = vpop.eup %998 }
 0x17b   : > { %v444_v2 = vpop.permute.xlu1 %443  ;;  %v440_v4 = vpop.permute.xlu0 %439 }
 0x17c   : > { %v469_v23 = vadd.f32 %v444_v2, %v361_v54  ;;  %v468_v26 = vadd.f32 %v440_v4, %v360_v51  ;;  %v1001_v55 = vpop.eup %1000 }
 0x17d   : > { %v1003_v60 = vpop.eup %1002 }
 0x17e   : > { %1008 = vtanh.f32 %v469_v23 }
 0x17f   : > { %v633_v11 = vpop.permute.xlu1 %632  ;;  %v629_v13 = vpop.permute.xlu0 %628  ;;  %1010 = vtanh.f32 %v468_v26 }
 0x180   : > { %v655_v45 = vadd.f32 %v633_v11, %v1184_v57  ;;  %v654_v47 = vadd.f32 %v629_v13, %v1190_v61 }
 0x183   : > { %v455_v21 = vpop.permute.xlu1 %454  ;;  %v451_v24 = vpop.permute.xlu0 %450 }
 0x184   : > { %v471_v28 = vadd.f32 %v455_v21, %v361_v54  ;;  %v470_v30 = vadd.f32 %v451_v24, %v360_v51  ;;  %v1005_v1 = vpop.eup %1004 }
 0x185   : > { %v1007_v6 = vpop.eup %1006 }
 0x186   : > { %1012 = vtanh.f32 %v471_v28 }
 0x187   : > { %1014 = vtanh.f32 %v470_v30  ;;  %v641_v39 = vpop.permute.xlu1 %640  ;;  %v637_v40 = vpop.permute.xlu0 %636 }
 0x188   : > { %1016 = vtanh.f32 %v649_v32  ;;  %v657_v51 = vadd.f32 %v641_v39, %v1184_v57  ;;  %v656_v56 = vadd.f32 %v637_v40, %v1190_v61 }
 0x189   : > { %1018 = vtanh.f32 %v651_v34 }
 0x18a   : > { %1020 = vtanh.f32 %v650_v36 }
 0x18b   : > { %1022 = vtanh.f32 %v653_v38  ;;  %v1009_v8 = vpop.eup %1008 }
 0x18c   : > { %1024 = vtanh.f32 %v652_v43  ;;  %v1011_v11 = vpop.eup %1010 }
 0x18d   : > { %1026 = vtanh.f32 %v655_v45 }
 0x18e   : > { %1028 = vtanh.f32 %v654_v47 }
 0x18f   : > { %1030 = vtanh.f32 %v657_v51 }
 0x190   : > { %1032 = vtanh.f32 %v656_v56 }
 0x193   : > { %v1013_v16 = vpop.eup %1012 }
 0x194   : > { %v496_v48 = vpop.permute.xlu1 %495  ;;  %v491_v49 = vpop.permute.xlu0 %490 }
 0x195   : > { %v499_v52 = vmul.f32 %v977_v25, %v496_v48  ;;  %v501_v53 = vmul.f32 %v975_v22, %v496_v48  ;;  %v503_v54 = vmul.f32 %v987_v35, %v496_v48  ;;  %v498_v58 = vmul.f32 %v973_v19, %v491_v49  ;;  %v1015_v21 = vpop.eup %1014 }
 0x196   : > { %v500_v59 = vmul.f32 %v971_v17, %v491_v49  ;;  %v505_v62 = vmul.f32 %v995_v44, %v496_v48  ;;  %v502_v63 = vmul.f32 %v989_v37, %v491_v49  ;;  %v504_v0 = vmul.f32 %v997_v46, %v491_v49  ;;  %v1017_v26 = vpop.eup %1016 }
 0x197   : > { %v514_v2 = vadd.f32 %v499_v52, %v498_v58  ;;  %v507_v12 = vmul.f32 %v1001_v55, %v496_v48  ;;  %v509_v22 = vmul.f32 %v1005_v1, %v496_v48  ;;  %v506_v23 = vmul.f32 %v1003_v60, %v491_v49 }
 0x198   : > { %v521_v3 = vadd.f32 %v501_v53, %v500_v59  ;;  %v1219_v4 = vpop.permute.xlu1 %676  ;;  %v1221_v57 = vpop.permute.xlu0 %681  ;;  %v528_v7 = vadd.f32 %v503_v54, %v502_v63  ;;  %v535_v13 = vadd.f32 %v505_v62, %v504_v0  ;;  %v508_v24 = vmul.f32 %v1007_v6, %v491_v49 }
 0x199   : > { %v684_v61 = vmul.f32 %v981_v29, %v1219_v4  ;;  %v515_v9 = vrot.slane %v514_v2, 4  ;;  %v686_v14 = vmul.f32 %v985_v33, %v1219_v4  ;;  %v685_v15 = vmul.f32 %v1199_v27, %v1221_v57  ;;  %v1019_v27 = vpop.eup %1018 }
 0x19a   : > { %v522_v10 = vrot.slane %v521_v3, 4  ;;  %v529_v19 = vrot.slane %v528_v7, 4  ;;  %v687_v20 = vmul.f32 %v1201_v31, %v1221_v57  ;;  %v688_v28 = vmul.f32 %v993_v42, %v1219_v4  ;;  %v1021_v31 = vpop.eup %1020 }
 0x19b   : > { %v516_v17 = vadd.f32 %v515_v9, %v514_v2  ;;  %v700_v25 = vadd.f32 %v685_v15, %v684_v61  ;;  %v690_v29 = vmul.f32 %v999_v50, %v1219_v4  ;;  %v510_v30 = vmul.f32 %v1011_v11, %v491_v49  ;;  %v1023_v43 = vpop.eup %1022 }
 0x19c   : > { %v523_v18 = vadd.f32 %v522_v10, %v521_v3  ;;  %v511_v32 = vmul.f32 %v1009_v8, %v496_v48  ;;  %v689_v33 = vmul.f32 %v1211_v41, %v1221_v57  ;;  %v707_v34 = vadd.f32 %v687_v20, %v686_v14  ;;  %v1025_v53 = vpop.eup %1024 }
 0x19d   : > { %v517_v35 = vrot.slane %v516_v17, 2  ;;  %v512_v37 = vmul.f32 %v1015_v21, %v491_v49  ;;  %v513_v38 = vmul.f32 %v1013_v16, %v496_v48  ;;  %v530_v39 = vadd.f32 %v529_v19, %v528_v7  ;;  %v1027_v58 = vpop.eup %1026 }
 0x19e   : > { %v524_v36 = vrot.slane %v523_v18, 2  ;;  %v536_v40 = vrot.slane %v535_v13, 4  ;;  %v691_v44 = vmul.f32 %v1017_v26, %v1221_v57  ;;  %v701_v42 = vrot.slane %v700_v25, 4  ;;  %v1029_v62 = vpop.eup %1028 }
 0x19f   : > { %v518_v45 = vadd.f32 %v517_v35, %v516_v17  ;;  %v542_v46 = vadd.f32 %v507_v12, %v506_v23  ;;  %v531_v50 = vrot.slane %v530_v39, 2  ;;  %v549_v52 = vadd.f32 %v509_v22, %v508_v24  ;;  %v1031_v3 = vpop.eup %1030 }
 0x1a0   : > { %v525_v47 = vadd.f32 %v524_v36, %v523_v18  ;;  %v537_v51 = vadd.f32 %v536_v40, %v535_v13  ;;  %v708_v41 = vrot.slane %v707_v34, 4  ;;  %v714_v54 = vadd.f32 %v689_v33, %v688_v28  ;;  %v1033_v9 = vpop.eup %1032 }
 0x1a1   : > { %v543_v55 = vrot.slane %v542_v46, 4  ;;  %v556_v56 = vadd.f32 %v511_v32, %v510_v30  ;;  %v532_v49 = vadd.f32 %v531_v50, %v530_v39  ;;  %v550_v59 = vrot.slane %v549_v52, 4 }
 0x1a2   : > { %v538_v48 = vrot.slane %v537_v51, 2  ;;  %v563_v60 = vadd.f32 %v513_v38, %v512_v37  ;;  %v519_v63 = vrot.slane %v518_v45, 1  ;;  %v1235_v2 = vand.u32 127, %v368_v5 }
 0x1a3   : > { %v544_v0 = vadd.f32 %v543_v55, %v542_v46  ;;  %v557_v1 = vrot.slane %v556_v56, 4  ;;  %v692_v6 = vmul.f32 %v1021_v31, %v1219_v4  ;;  %v694_v7 = vmul.f32 %v1025_v53, %v1219_v4 }
 0x1a4   : > { %v702_v61 = vadd.f32 %v701_v42, %v700_v25  ;;  %v526_v8 = vrot.slane %v525_v47, 1  ;;  %v709_v10 = vadd.f32 %v708_v41, %v707_v34  ;;  %v715_v11 = vrot.slane %v714_v54, 4 }
 0x1a5   : > { %v533_v12 = vrot.slane %v532_v49, 1  ;;  %v551_v13 = vadd.f32 %v550_v59, %v549_v52  ;;  %v693_v14 = vmul.f32 %v1019_v27, %v1221_v57  ;;  %v721_v15 = vadd.f32 %v691_v44, %v690_v29 }
 0x1a6   : > { %v1240_v16 = vadd.f32 %v538_v48, %v537_v51  ;;  %v564_v17 = vrot.slane %v563_v60, 4  ;;  %v695_v5 = vmul.f32 %v1023_v43, %v1221_v57  ;;  %v520_v18 = vadd.f32 %v519_v63, %v518_v45 }
 0x1a7   : > { %v545_v19 = vrot.slane %v544_v0, 2  ;;  %v558_v20 = vadd.f32 %v557_v1, %v556_v56  ;;  %v527_v21 = vadd.f32 %v526_v8, %v525_v47  ;;  %v696_v22 = vmul.f32 %v1029_v62, %v1219_v4 }
 0x1a8   : > { %v697_v23 = vmul.f32 %v1027_v58, %v1221_v57  ;;  %v703_v24 = vrot.slane %v702_v61, 2  ;;  %v534_v25 = vadd.f32 %v533_v12, %v532_v49  ;;  %v552_v26 = vrot.slane %v551_v13, 2 }
 0x1a9   : > { %v710_v28 = vrot.slane %v709_v10, 2  ;;  %v716_v30 = vadd.f32 %v715_v11, %v714_v54  ;;  %v540_v29 = vrot.slane %v1240_v16, 1  ;;  %v565_v32 = vadd.f32 %v564_v17, %v563_v60 }
 0x1aa   : > { %v704_v27 = vadd.f32 %v703_v24, %v702_v61  ;;  %v722_v33 = vrot.slane %v721_v15, 4  ;;  %v546_v34 = vadd.f32 %v545_v19, %v544_v0  ;;  %v559_v35 = vrot.slane %v558_v20, 2 }
 0x1ab   : > { %v711_v36 = vadd.f32 %v710_v28, %v709_v10  ;;  %v717_v31 = vrot.slane %v716_v30, 2  ;;  %v698_v37 = vmul.f32 %v1033_v9, %v1219_v4  ;;  %v699_v38 = vmul.f32 %v1031_v3, %v1221_v57 }
 0x1ac   : > { %v705_v39 = vrot.slane %v704_v27, 1  ;;  %v723_v40 = vadd.f32 %v722_v33, %v721_v15  ;;  %v553_v43 = vadd.f32 %v552_v26, %v551_v13  ;;  %v728_v45 = vadd.f32 %v693_v14, %v692_v6 }
 0x1ad   : > { %v712_v44 = vrot.slane %v711_v36, 1  ;;  %v718_v42 = vadd.f32 %v717_v31, %v716_v30  ;;  %v566_v46 = vrot.slane %v565_v32, 2  ;;  %v735_v51 = vadd.f32 %v695_v5, %v694_v7 }
 0x1ae   : > { %v706_v47 = vadd.f32 %v705_v39, %v704_v27  ;;  %v724_v50 = vrot.slane %v723_v40, 2  ;;  %v729_v41 = vrot.slane %v728_v45, 4  ;;  %v742_v54 = vadd.f32 %v697_v23, %v696_v22 }
 0x1af   : > { %v713_v52 = vadd.f32 %v712_v44, %v711_v36  ;;  %v719_v53 = vrot.slane %v718_v42, 1  ;;  %v736_v56 = vrot.slane %v735_v51, 4  ;;  %v749_v4 = vadd.f32 %v699_v38, %v698_v37 }
 0x1b0   : > { %v725_v55 = vadd.f32 %v724_v50, %v723_v40  ;;  %v756_v58 = vadd.f32 %v706_v47, %v520_v18  ;;  %v730_v49 = vadd.f32 %v729_v41, %v728_v45  ;;  %v743_v48 = vrot.slane %v742_v54, 4 }
 0x1b1   : > { %v720_v57 = vadd.f32 %v719_v53, %v718_v42  ;;  %v757_v59 = vadd.f32 %v713_v52, %v527_v21  ;;  %v560_v60 = vadd.f32 %v559_v35, %v558_v20  ;;  %v737_v63 = vadd.f32 %v736_v56, %v735_v51 }
 0x1b2   : > { %v726_v62 = vrot.slane %v725_v55, 1  ;;  %v750_v0 = vrot.slane %v749_v4, 4  ;;  %v567_v1 = vadd.f32 %v566_v46, %v565_v32  ;;  %v731_v3 = vrot.slane %v730_v49, 2 }
 0x1b3   : > { %v744_v6 = vadd.f32 %v743_v48, %v742_v54  ;;  %v758_v7 = vadd.f32 %v720_v57, %v534_v25  ;;  %v738_v8 = vrot.slane %v737_v63, 2  ;;  %v776_v10 = vsel %vm775_vm2, %v757_v59, %v756_v58 }
 0x1b4   : > { %v727_v61 = vadd.f32 %v726_v62, %v725_v55  ;;  %v751_v9 = vadd.f32 %v750_v0, %v749_v4  ;;  %v547_v11 = vrot.slane %v546_v34, 1  ;;  %v732_v12 = vadd.f32 %v731_v3, %v730_v49 }
 0x1b5   : > { %v745_v13 = vrot.slane %v744_v6, 2  ;;  %v541_v14 = vadd.f32 %v540_v29, %v1240_v16  ;;  %v554_v15 = vrot.slane %v553_v43, 1  ;;  %v739_v17 = vadd.f32 %v738_v8, %v737_v63 }
 0x1b6   : > { %v752_v5 = vrot.slane %v751_v9, 2  ;;  %v561_v18 = vrot.slane %v560_v60, 1  ;;  %v733_v19 = vrot.slane %v732_v12, 1  ;;  %v778_v21 = vsel %vm777_vm3, %v758_v7, %v776_v10 }
 0x1b7   : > { %v746_v20 = vadd.f32 %v745_v13, %v744_v6  ;;  %v568_v22 = vrot.slane %v567_v1, 1  ;;  %v740_v23 = vrot.slane %v739_v17, 1  ;;  %v759_v25 = vadd.f32 %v727_v61, %v541_v14 }
 0x1b8   : > { %v753_v24 = vadd.f32 %v752_v5, %v751_v9  ;;  %v548_v26 = vadd.f32 %v547_v11, %v546_v34  ;;  %v734_v28 = vadd.f32 %v733_v19, %v732_v12  ;;  %v555_v32 = vadd.f32 %v554_v15, %v553_v43 }
 0x1b9   : > { %v747_v30 = vrot.slane %v746_v20, 1  ;;  %v741_v27 = vadd.f32 %v740_v23, %v739_v17  ;;  %v780_v16 = vsel %vm779_vm4, %v759_v25, %v778_v21  ;;  %v562_v29 = vadd.f32 %v561_v18, %v560_v60 }
 0x1ba   : > { %v754_v33 = vrot.slane %v753_v24, 1  ;;  %v760_v36 = vadd.f32 %v734_v28, %v548_v26  ;;  %v569_v31 = vadd.f32 %v568_v22, %v567_v1  ;;  %vm766_vm9 = vcmp.lt.s32.totalorder %v1235_v2, 8 }
 0x1bb   : > { %v748_v35 = vadd.f32 %v747_v30, %v746_v20  ;;  %v761_v38 = vadd.f32 %v741_v27, %v555_v32 }
 0x1bc   : > { %v755_v37 = vadd.f32 %v754_v33, %v753_v24  ;;  %v782_v40 = vsel %vm781_vm5, %v760_v36, %v780_v16 }
 0x1bd   : > { %v762_v39 = vadd.f32 %v748_v35, %v562_v29  ;;  %v784_v43 = vsel %vm783_vm6, %v761_v38, %v782_v40 }
 0x1be   : > { %v763_v34 = vadd.f32 %v755_v37, %v569_v31 }
 0x1bf   : > { %v786_v44 = vsel %vm785_vm7, %v762_v39, %v784_v43 }
 0x1c0   : > { %v788_v42 = vsel %vm787_vm8, %v763_v34, %v786_v44 }
 0x1c1   : > { %v790_v45 = vsel %vm766_vm9, %v788_v42, -1e+30 }
 0x1c2   : > { %791 = vmax.xlane.f32.xlu1 %v790_v45 }
 0x24b   : > { %v792_v46 = vpop.xlane.xlu1 %791 }
 0x24c   : > { %v793_v47 = vsub.f32 %v790_v45, %v792_v46 }
 0x24e   : > { %v794_v50 = vmul.f32 1.442695, %v793_v47 }
 0x250   : > { %1034 = vpow2.f32 %v794_v50 }
 0x25d   : > { %v1035_v51 = vpop.eup %1034 }
 0x25e   : > { %796 = vadd.xlane.f32.xlu0 %v1035_v51 }
 0x2e7   : > { %v797_v52 = vpop.xlane.xlu0 %796 }
 0x2e8   : > { %1036 = vrcp.f32 %v797_v52 }
 0x2f5   : > { %v1037_v53 = vpop.eup %1036 }
 0x2f6   : > { %v799_v2 = vmul.f32 %v1037_v53, %v1035_v51 }
 0x2f8   : > { %800 = vst [vmem:[%s275_s8] sm:$0xff] %v799_v2 }
 0x2f9 PF: > { %s15_s22 = sadd.s32 1, %s1076_s22   ;;  %s1279_s18 = smov %s1068_s20 }
 0x2fa   : > { %p12_p7 = scmp.ge.s32.totalorder %s15_s22, 6   ;;  %s1280_s19 = smov %s1072_s21 }
 0x2fb   : > { %s1281_s20 = smov %s1284_s23  ;;  %s1282_s21 = smov %s1288_s24 }
 0x2fc   :  { %14 = sbr.rel (!%p12_p7) target bundleno = 3 (0x3), region = 73 }

</bundles_post_ra>
